<compile_context>
chip_gen: v5e
topology: v5e:2x2
jax: 0.10.0
libtpu: 0.0.40
codegen_flags: <defaults>
</compile_context>

<pallas_src>
import jax
import jax.numpy as jnp
from jax import lax
from jax.experimental import pallas as pl
from jax.experimental.pallas import tpu as pltpu

_LANE = 128


def _auto_budget():
    """(target_tile_bytes, vmem_limit_bytes) per TPU generation."""
    try:
        vmem_cap = int(pltpu.get_tpu_info().vmem_capacity_bytes)
    except Exception:
        vmem_cap = 64 * 1024 * 1024
    if vmem_cap >= 100 * 1024 * 1024:                 # v5e / v6e: 128 MiB VMEM
        return 16 * 1024 * 1024, 96 * 1024 * 1024
    return 10 * 1024 * 1024, 44 * 1024 * 1024         # v7x: 64 MiB VMEM per TC


def filter_layer(x_nchw, w1, b1, w2, b2, *, target_tile_bytes=None,
                 vmem_limit_bytes=None):
    """x_nchw: (B, C, H, W) in its native dtype (f32 or bf16).
    w1: (hidden, in_planes), b1: (hidden,), w2: (out_planes, hidden), b2: (out_planes,)
    in PyTorch nn.Linear (out, in) layout.  Returns (B, out_planes, 1, 1) f32."""
    B, C, H, W = x_nchw.shape
    hidden, in_planes = w1.shape
    out_planes = w2.shape[0]
    assert in_planes == C

    S = H * W
    x_flat = x_nchw.reshape(B, C, S)                  # native dtype; no pad, no upcast

    # Fold the 1/(H*W) mean scale into W1 (tiny one-time transform).
    inv_hw = 1.0 / float(S)
    w1_t = jnp.asarray(w1, jnp.float32).T * inv_hw    # (C, hidden)
    w2_t = jnp.asarray(w2, jnp.float32).T             # (hidden, out_planes)
    b1_r = jnp.asarray(b1, jnp.float32).reshape(1, hidden)
    b2_r = jnp.asarray(b2, jnp.float32).reshape(1, out_planes)

    itemsize = jnp.dtype(x_flat.dtype).itemsize

    auto_tile, auto_limit = _auto_budget()
    if target_tile_bytes is None:
        target_tile_bytes = auto_tile
    if vmem_limit_bytes is None:
        vmem_limit_bytes = auto_limit

    # Channel dim is the sublane dim of the (TB, C, TS) block; account for its
    # padding (f32: 8, bf16: 16, int8: 32 sublanes) so the VMEM budget is honest.
    sublane = 8 * max(1, 4 // itemsize)
    c_pad = -(-C // sublane) * sublane

    # ---- batch tile -------------------------------------------------------------
    TB = min(B, 8)
    if B >= 2:
        TB = min(TB, -(-B // 2))          # >= 2 batch blocks -> v7x dual-TC sharding
    # Wide-channel clamp: the minimum 128-lane tile must respect the byte budget.
    TB = max(1, min(TB, target_tile_bytes // max(1, c_pad * itemsize * _LANE)))
    NB = pl.cdiv(B, TB)

    # ---- spatial (lane) tile ------------------------------------------------------
    row_bytes = TB * c_pad * itemsize
    if S < _LANE:
        TS = S                                            # block == full spatial dim
    else:
        budget_ts = max(_LANE, (target_tile_bytes // (row_bytes * _LANE)) * _LANE)
        if itemsize < 4:
            budget_ts = max(budget_ts, 2 * _LANE)         # >= 512 B contiguous rows
        TS = min(budget_ts, (S // _LANE) * _LANE)         # multiple of 128, <= S
    NS = pl.cdiv(S, TS)
    has_tail = (S % TS) != 0              # last spatial step is partial -> mask in-kernel

    def kernel(x_ref, w1_ref, b1_ref, w2_ref, b2_ref, o_ref, acc_ref):
        si = pl.program_id(1)

        @pl.when(si == 0)
        def _init():
            acc_ref[...] = jnp.zeros_like(acc_ref)

        tb, c, ts = x_ref.shape

        # ---- streaming pooled-sum accumulation (HBM-bound hot loop) --------------
        if ts % _LANE != 0:
            # Tiny spatial slab (ts == S < 128): single small chunk, no tail.
            acc_ref[...] += jnp.sum(x_ref[...].astype(jnp.float32), axis=-1)
        else:
            n_blk = ts // _LANE
            unroll = max(1, min(8, n_blk))
            zero = jnp.zeros((tb, c, _LANE), jnp.float32)

            def fold_full(k, acc):
                start = pl.multiple_of(k * _LANE, _LANE)
                # Per-slice load + cast: only one lane block is ever live in f32.
                return acc + x_ref[:, :, pl.ds(start, _LANE)].astype(jnp.float32)

            def reduce_with(fold):
                part = lax.fori_loop(0, n_blk, fold, zero, unroll=unroll)
                acc_ref[...] += jnp.sum(part, axis=-1)

            if has_tail:
                last = pl.num_programs(1) - 1
                lane_iota = lax.broadcasted_iota(jnp.int32, (1, 1, _LANE), 2)
                rem = S - si * ts                 # valid spatial elems in this step

                def fold_masked(k, acc):
                    start = pl.multiple_of(k * _LANE, _LANE)
                    blk = x_ref[:, :, pl.ds(start, _LANE)].astype(jnp.float32)
                    keep = lane_iota < (rem - k * _LANE)
                    return acc + jnp.where(keep, blk, 0.0)

                @pl.when(si < last)
                def _full_steps():
                    reduce_with(fold_full)

                @pl.when(si == last)
                def _tail_step():
                    reduce_with(fold_masked)
            else:
                reduce_with(fold_full)

        # ---- finalize: tiny FC -> ReLU -> FC -> sigmoid, once per batch block ----
        @pl.when(si == pl.num_programs(1) - 1)
        def _finalize():
            pooled = acc_ref[...]                     # (TB, C); 1/(H*W) folded into w1
            h = jnp.dot(pooled, w1_ref[...],
                        preferred_element_type=jnp.float32) + b1_ref[...]
            h = jnp.maximum(h, 0.0)
            y = jnp.dot(h, w2_ref[...],
                        preferred_element_type=jnp.float32) + b2_ref[...]
            o_ref[0] = jax.nn.sigmoid(y).astype(o_ref.dtype)

    out = pl.pallas_call(
        kernel,
        # (NB, TB, out_planes): batch tile sits in a leading (untiled) axis so TB
        # carries no (8,128) layout constraint; padded rows are sliced off below.
        out_shape=jax.ShapeDtypeStruct((NB, TB, out_planes), jnp.float32),
        grid_spec=pltpu.PrefetchScalarGridSpec(
            num_scalar_prefetch=0,
            grid=(NB, NS),
            in_specs=[
                pl.BlockSpec((TB, C, TS), lambda b, s: (b, 0, s)),
                pl.BlockSpec((C, hidden), lambda b, s: (0, 0)),
                pl.BlockSpec((1, hidden), lambda b, s: (0, 0)),
                pl.BlockSpec((hidden, out_planes), lambda b, s: (0, 0)),
                pl.BlockSpec((1, out_planes), lambda b, s: (0, 0)),
            ],
            # Same output block across the spatial axis -> resident in VMEM.
            out_specs=pl.BlockSpec((1, TB, out_planes), lambda b, s: (b, 0, 0)),
            scratch_shapes=[pltpu.VMEM((TB, C), jnp.float32)],
        ),
        compiler_params=pltpu.CompilerParams(
            dimension_semantics=("parallel", "arbitrary"),
            vmem_limit_bytes=vmem_limit_bytes,
        ),
    )(x_flat, w1_t, b1_r, w2_t, b2_r)

    # Drop padding rows of the last (possibly partial) batch block and match
    # PyTorch's .view(b, out_planes, 1, 1).
    return out.reshape(NB * TB, out_planes)[:B].reshape(B, out_planes, 1, 1)


def _reference(x_nchw, w1, b1, w2, b2):
    pooled = jnp.mean(x_nchw.astype(jnp.float32), axis=(2, 3))        # (B, C)
    h = jnp.maximum(pooled @ w1.T + b1, 0.0)
    y = jax.nn.sigmoid(h @ w2.T + b2)
    return y.reshape(x_nchw.shape[0], w2.shape[0], 1, 1)


if __name__ == "__main__":
    key = jax.random.PRNGKey(0)
    kx, kw1, kb1, kw2, kb2, kx2 = jax.random.split(key, 6)

    # FilterLayer(in_planes=4, out_planes=32, reduction=16) -> hidden = 2
    in_planes, out_planes, reduction = 4, 32, 16
    hidden = out_planes // reduction

    # PyTorch nn.Linear weight layout: (out, in).
    w1 = jax.random.normal(kw1, (hidden, in_planes), dtype=jnp.float32) * 0.1
    b1 = jax.random.normal(kb1, (hidden,), dtype=jnp.float32) * 0.1
    w2 = jax.random.normal(kw2, (out_planes, hidden), dtype=jnp.float32) * 0.1
    b2 = jax.random.normal(kb2, (out_planes,), dtype=jnp.float32) * 0.1

    # Case 1: nominal small shape; single spatial block, no tail, 2 batch blocks.
    x1 = jax.random.normal(kx, (2, in_planes, 16, 16), dtype=jnp.float32)
    out1 = jax.block_until_ready(filter_layer(x1, w1, b1, w2, b2))
    ref1 = _reference(x1, w1, b1, w2, b2)
    assert out1.shape == (2, out_planes, 1, 1)
    assert jnp.allclose(out1, ref1, atol=1e-5, rtol=1e-5), "case 1 mismatch"

    # Case 2: ragged spatial size + partial batch block; a tiny tile budget forces
    # several spatial grid steps so the in-kernel tail-masking path is exercised.
    x2 = jax.random.normal(kx2, (3, in_planes, 17, 17), dtype=jnp.float32)
    out2 = jax.block_until_ready(
        filter_layer(x2, w1, b1, w2, b2, target_tile_bytes=8192))
    ref2 = _reference(x2, w1, b1, w2, b2)
    assert out2.shape == (3, out_planes, 1, 1)
    assert jnp.allclose(out2, ref2, atol=1e-5, rtol=1e-5), "case 2 mismatch"

    # Case 3: bf16 input down the same streaming path (per-slice cast to f32).
    x3 = x2.astype(jnp.bfloat16)
    out3 = jax.block_until_ready(
        filter_layer(x3, w1, b1, w2, b2, target_tile_bytes=8192))
    ref3 = _reference(x3, w1, b1, w2, b2)
    assert jnp.allclose(out3, ref3, atol=1e-4, rtol=1e-4), "case 3 mismatch"

    print("KERNEL_OK")
</pallas_src>

<mosaic_0001>
module attributes {stable_mosaic.version = 11 : i64} {
  func.func @kernel(%arg0: i32, %arg1: i32, %arg2: memref<1x4x256xf32, #tpu.memory_space<vmem>>, %arg3: memref<4x2xf32, #tpu.memory_space<vmem>>, %arg4: memref<1x2xf32, #tpu.memory_space<vmem>>, %arg5: memref<2x32xf32, #tpu.memory_space<vmem>>, %arg6: memref<1x32xf32, #tpu.memory_space<vmem>>, %arg7: memref<1x1x32xf32, #tpu.memory_space<vmem>>, %arg8: memref<1x4xf32, #tpu.memory_space<vmem>>) attributes {dimension_semantics = [#tpu.dimension_semantics<parallel>, #tpu.dimension_semantics<arbitrary>], iteration_bounds = array<i64: 2, 1>, scalar_prefetch = 0 : i64, scratch_operands = 1 : i64, tpu.core_type = #tpu.core_type<tc>, window_params = [{transform_indices = @transform_0, window_bounds = array<i64: 1, 4, 256>}, {pipeline_mode = #tpu.pipeline_mode<synchronous>, transform_indices = @transform_1, window_bounds = array<i64: 4, 2>}, {pipeline_mode = #tpu.pipeline_mode<synchronous>, transform_indices = @transform_2, window_bounds = array<i64: 1, 2>}, {pipeline_mode = #tpu.pipeline_mode<synchronous>, transform_indices = @transform_3, window_bounds = array<i64: 2, 32>}, {pipeline_mode = #tpu.pipeline_mode<synchronous>, transform_indices = @transform_4, window_bounds = array<i64: 1, 32>}, {transform_indices = @transform_5, window_bounds = array<i64: 1, 1, 32>}]} {
    %c0_i32 = arith.constant 0 : i32
    %0 = arith.cmpi eq, %arg1, %c0_i32 : i32
    %1 = arith.extui %0 : i1 to i32
    %c0_i32_0 = arith.constant 0 : i32
    %2 = arith.cmpi ne, %1, %c0_i32_0 : i32
    scf.if %2 {
      %cst_13 = arith.constant 0.000000e+00 : f32
      %21 = vector.broadcast %cst_13 : f32 to vector<1x4xf32>
      %c0_14 = arith.constant 0 : index
      %c0_15 = arith.constant 0 : index
      %22 = vector.load %arg8[%c0_14, %c0_15] : memref<1x4xf32, #tpu.memory_space<vmem>>, vector<1x4xf32>
      tpu.vector_store %arg8[%c0_14, %c0_15], %21 {strides = array<i32>} : memref<1x4xf32, #tpu.memory_space<vmem>>, vector<1x4xf32>,
    } else {
    }
    %cst = arith.constant 0.000000e+00 : f32
    %3 = vector.broadcast %cst : f32 to vector<1x4x128xf32>
    %c0_i32_1 = arith.constant 0 : i32
    %c128_i32 = arith.constant 128 : i32
    %4 = arith.muli %c0_i32_1, %c128_i32 : i32
    %5 = tpu.assume_multiple %4, 128 : i32
    %c0 = arith.constant 0 : index
    %c0_2 = arith.constant 0 : index
    %6 = arith.index_cast %5 : i32 to index
    %7 = vector.load %arg2[%c0, %c0_2, %6] : memref<1x4x256xf32, #tpu.memory_space<vmem>>, vector<1x4x128xf32>
    %8 = arith.addf %3, %7 : vector<1x4x128xf32>
    %c1_i32 = arith.constant 1 : i32
    %c128_i32_3 = arith.constant 128 : i32
    %9 = arith.muli %c1_i32, %c128_i32_3 : i32
    %10 = tpu.assume_multiple %9, 128 : i32
    %c0_4 = arith.constant 0 : index
    %c0_5 = arith.constant 0 : index
    %11 = arith.index_cast %10 : i32 to index
    %12 = vector.load %arg2[%c0_4, %c0_5, %11] : memref<1x4x256xf32, #tpu.memory_space<vmem>>, vector<1x4x128xf32>
    %13 = arith.addf %8, %12 : vector<1x4x128xf32>
    %c2_i32 = arith.constant 2 : i32
    %c0_6 = arith.constant 0 : index
    %c0_7 = arith.constant 0 : index
    %14 = vector.load %arg8[%c0_6, %c0_7] : memref<1x4xf32, #tpu.memory_space<vmem>>, vector<1x4xf32>
    %cst_8 = arith.constant dense<0.000000e+00> : vector<1x4xf32>
    %15 = vector.multi_reduction <add>, %13, %cst_8 [2] : vector<1x4x128xf32> to vector<1x4xf32>
    %16 = arith.addf %14, %15 : vector<1x4xf32>
    %c0_9 = arith.constant 0 : index
    %c0_10 = arith.constant 0 : index
    %17 = vector.load %arg8[%c0_9, %c0_10] : memref<1x4xf32, #tpu.memory_space<vmem>>, vector<1x4xf32>
    tpu.vector_store %arg8[%c0_9, %c0_10], %16 {strides = array<i32>} : memref<1x4xf32, #tpu.memory_space<vmem>>, vector<1x4xf32>,
    %c0_i32_11 = arith.constant 0 : i32
    %18 = arith.cmpi eq, %arg1, %c0_i32_11 : i32
    %19 = arith.extui %18 : i1 to i32
    %c0_i32_12 = arith.constant 0 : i32
    %20 = arith.cmpi ne, %19, %c0_i32_12 : i32
    scf.if %20 {
      %c0_13 = arith.constant 0 : index
      %c0_14 = arith.constant 0 : index
      %21 = vector.load %arg8[%c0_13, %c0_14] : memref<1x4xf32, #tpu.memory_space<vmem>>, vector<1x4xf32>
      %c0_15 = arith.constant 0 : index
      %c0_16 = arith.constant 0 : index
      %22 = vector.load %arg3[%c0_15, %c0_16] : memref<4x2xf32, #tpu.memory_space<vmem>>, vector<4x2xf32>
      %cst_17 = arith.constant dense<0.000000e+00> : vector<1x2xf32>
      %23 = tpu.matmul %21, %22, %cst_17 {dimension_numbers = #tpu.dot_dimension_numbers<[1], [0], [0], [1], [0, 0, 1, 1], [], []>} : vector<1x4xf32>, vector<4x2xf32>, vector<1x2xf32> -> vector<1x2xf32>
      %c0_18 = arith.constant 0 : index
      %c0_19 = arith.constant 0 : index
      %24 = vector.load %arg4[%c0_18, %c0_19] : memref<1x2xf32, #tpu.memory_space<vmem>>, vector<1x2xf32>
      %25 = arith.addf %23, %24 : vector<1x2xf32>
      %cst_20 = arith.constant 0.000000e+00 : f32
      %26 = vector.broadcast %cst_20 : f32 to vector<1x2xf32>
      %27 = arith.maximumf %25, %26 : vector<1x2xf32>
      %c0_21 = arith.constant 0 : index
      %c0_22 = arith.constant 0 : index
      %28 = vector.load %arg5[%c0_21, %c0_22] : memref<2x32xf32, #tpu.memory_space<vmem>>, vector<2x32xf32>
      %cst_23 = arith.constant dense<0.000000e+00> : vector<1x32xf32>
      %29 = tpu.matmul %27, %28, %cst_23 {dimension_numbers = #tpu.dot_dimension_numbers<[1], [0], [0], [1], [0, 0, 1, 1], [], []>} : vector<1x2xf32>, vector<2x32xf32>, vector<1x32xf32> -> vector<1x32xf32>
      %c0_24 = arith.constant 0 : index
      %c0_25 = arith.constant 0 : index
      %30 = vector.load %arg6[%c0_24, %c0_25] : memref<1x32xf32, #tpu.memory_space<vmem>>, vector<1x32xf32>
      %31 = arith.addf %29, %30 : vector<1x32xf32>
      %32 = arith.negf %31 : vector<1x32xf32>
      %33 = math.exp %32 : vector<1x32xf32>
      %cst_26 = arith.constant 1.000000e+00 : f32
      %34 = vector.broadcast %cst_26 : f32 to vector<1x32xf32>
      %35 = arith.addf %34, %33 : vector<1x32xf32>
      %36 = arith.divf %34, %35 : vector<1x32xf32>
      %c0_27 = arith.constant 0 : index
      %c0_28 = arith.constant 0 : index
      %c0_29 = arith.constant 0 : index
      %37 = vector.load %arg7[%c0_27, %c0_28, %c0_29] : memref<1x1x32xf32, #tpu.memory_space<vmem>>, vector<1x1x32xf32>
      %38 = vector.shape_cast %37 : vector<1x1x32xf32> to vector<1x32xf32>
      %39 = vector.shape_cast %36 : vector<1x32xf32> to vector<1x1x32xf32>
      tpu.vector_store %arg7[%c0_27, %c0_28, %c0_29], %39 {strides = array<i32>} : memref<1x1x32xf32, #tpu.memory_space<vmem>>, vector<1x1x32xf32>,
    } else {
    }
    return
  }
  func.func @transform_0(%arg0: i32, %arg1: i32) -> (i32, i32, i32) {
    %c0_i32 = arith.constant 0 : i32
    %c0_i32_0 = arith.constant 0 : i32
    return %arg0, %c0_i32, %arg1 : i32, i32, i32
  }
  func.func @transform_1(%arg0: i32, %arg1: i32) -> (i32, i32) {
    %c0_i32 = arith.constant 0 : i32
    %c0_i32_0 = arith.constant 0 : i32
    %c0_i32_1 = arith.constant 0 : i32
    return %c0_i32, %c0_i32_0 : i32, i32
  }
  func.func @transform_2(%arg0: i32, %arg1: i32) -> (i32, i32) {
    %c0_i32 = arith.constant 0 : i32
    %c0_i32_0 = arith.constant 0 : i32
    %c0_i32_1 = arith.constant 0 : i32
    return %c0_i32, %c0_i32_0 : i32, i32
  }
  func.func @transform_3(%arg0: i32, %arg1: i32) -> (i32, i32) {
    %c0_i32 = arith.constant 0 : i32
    %c0_i32_0 = arith.constant 0 : i32
    %c0_i32_1 = arith.constant 0 : i32
    return %c0_i32, %c0_i32_0 : i32, i32
  }
  func.func @transform_4(%arg0: i32, %arg1: i32) -> (i32, i32) {
    %c0_i32 = arith.constant 0 : i32
    %c0_i32_0 = arith.constant 0 : i32
    %c0_i32_1 = arith.constant 0 : i32
    return %c0_i32, %c0_i32_0 : i32, i32
  }
  func.func @transform_5(%arg0: i32, %arg1: i32) -> (i32, i32, i32) {
    %c0_i32 = arith.constant 0 : i32
    %c0_i32_0 = arith.constant 0 : i32
    %c0_i32_1 = arith.constant 0 : i32
    return %arg0, %c0_i32, %c0_i32_0 : i32, i32, i32
  }
}

</mosaic_0001>

<bundles_post_ra>
// kernel: tpu_custom_call.1
= control target key start
LH: loop header
LB: loop body
LE: loop exit
PB: predicated region body
PF: predicated region fallthrough
CT: control target
= control target key end

     0   :  { %10 = vsyncpa [#allocation4], 0  ;;  %s843_s0 = inlined_call_operand.hbm [shape: f32[2,4,256], index: 0, kind: input, shape index: {}]   ;;  %s844_s1 = inlined_call_operand.vmem [shape: f32[4,2], index: 1, kind: input, shape index: {}]   ;;  %s845_s2 = inlined_call_operand.vmem [shape: f32[1,2], index: 2, kind: input, shape index: {}]   ;;  %s846_s3 = inlined_call_operand.vmem [shape: f32[2,32], index: 3, kind: input, shape index: {}]   ;;  %s847_s4 = inlined_call_operand.vmem [shape: f32[1,32], index: 4, kind: input, shape index: {}]   ;;  %s848_s5 = inlined_call_operand.hbm [shape: f32[2,1,32], index: 5, kind: output, shape index: {}]  }
   0x1   :  { %12 = vsyncpa [#allocation4 + $0x1], 0 }
   0x2   :  { %13 = vsyncpa [#allocation5], 0 }
   0x3   :  { %15 = vsyncpa [#allocation5 + $0x1], 0  ;;  %s706_s18 = smov 0   ;;  %s708_s19 = smov 0  }
   0x4   :  { %s710_s20 = smov 0   ;;  %s712_s21 = smov 0  }
   0x5   :  { %s714_s22 = smov 0   ;;  %s716_s23 = smov 0  }
   0x6 LB: > { %s473_s24 = sadd.s32 4294967295, %s672_s23   ;;  %s474_s25 = sadd.s32 4294967294, %s672_s23   ;;  %s672_s23 = sphi %s716_s23, %s21_s23   ;;  %s668_s22 = sphi %s714_s22, %s857_s22   ;;  %s664_s21 = sphi %s712_s21, %s856_s21   ;;  %s660_s20 = sphi %s710_s20, %s855_s20   ;;  %s656_s19 = sphi %s708_s19, %s854_s19   ;;  %s652_s18 = sphi %s706_s18, %s853_s18  }
   0x7   : > { %s33_s26 = sadd.s32 1, %s668_s22  ;;  %s42_s27 = sadd.s32 1, %s660_s20 }
   0x8   : > { %p35_p0 = scmp.ge.s32.totalorder %s33_s26, 2  ;;  %p49_p1 = scmp.ne.s32.totalorder %s660_s20, %s656_s19 }
   0x9   : > { %p50_p2 = scmp.eq.s32.totalorder %s672_s23, 0  ;;  %p55_p3 = scmp.ne.s32.totalorder %s656_s19, %s652_s18 }
   0xa   : > { %s859_s26 = smov (%p35_p0, %s33_s26), 0  ;;  %p56_p5 = scmp.eq.s32.totalorder %s473_s24, 0 }
   0xb   : > { %p747_p4 = por %p50_p2, %p49_p1  ;;  %s37_s29 = ssub.s32 %s668_s22, %s859_s26 }
   0xc   : > { %p163_p6 = scmp.eq.s32.totalorder %s473_s24, 1  ;;  %p40_p7 = scmp.eq.s32.totalorder %s37_s29, 0 }
   0xd   : > { %p753_p8 = por %p56_p5, %p55_p3  ;;  %p169_p10 = scmp.eq.s32.totalorder %s474_s25, 1 }
   0xe   : > { %p757_p9 = por %p163_p6, %p49_p1  ;;  %p476_p12 = scmp.ge.s32.totalorder %s672_s23, 2 }
   0xf   : > { %s762_s7 = scalar_select %p40_p7, %s660_s20, %s42_s27  }
  0x10   : > { %p764_p11 = por %p169_p10, %p55_p3  ;;  %p503_p13 = scmp.lt.s32.totalorder %s672_s23, 2 }
  0x11   : > { %s201_s9 = sand.u32 1, %s660_s20   ;;  %s490_s11 = sshll.u32 %s668_s22, 3 }
  0x12   : > { %s477_s10 = sshll.u32 %s201_s9, 3  ;;  %s212_s14 = scalar_lea.hbm %s843_s0, %s490_s11 }
  0x13   : > { %s205_s15 = scalar_lea.vmem [#allocation3], %s477_s10  ;;  %s214_s17 = sshll.u32 %s212_s14, 4  ;;  %s215_s17 = int_to_ptr.hbm [resolvable:$true] %s214_s17 }
  0x14   : > { %s216_s16 = sshll.u32 %s205_s15, 4  ;;  %p496_p0 = pnand %p503_p13, %p747_p4  ;;  %s217_s16 = int_to_ptr.vmem [resolvable:$true] %s216_s16 }
  0x15   : > { %p480_p1 = scmp.ge.s32.totalorder %s672_s23, 1  ;;  %p221_p2 = scmp.lt.s32.totalorder %s672_s23, 3 }
  0x16   : > { %s202_s24 = scalar_lea.sflag [#allocation4], %s201_s9 }
  0x17   : > { %498 = dma.hbm_to_vmem [thread:$0]  (!%p496_p0), %s215_s17, 128, %s217_s16, %s202_s24  }
  0x18   : > { %p222_p3 = pnand %p480_p1, %p221_p2 }
  0x19   : > { %s780_s25 = sand.u32 (!%p222_p3), 1, %s656_s19  }
  0x1a   : > { %225 = sbr.rel (%p222_p3) target bundleno = 581 (0x245), region = 40  ;;  %s481_s27 = sshll.u32 (!%p222_p3), %s780_s25, 3 }
  0x1b   : > { %s228_s29 = scalar_lea.sflag (!%p222_p3), [#allocation4], %s780_s25  ;;  %s231_s10 = scalar_lea.vmem (!%p222_p3), [#allocation3], %s481_s27 }
  0x1f   : > { %643 = dma.done.wait (%p753_p8), %s228_s29, 128  }
  0x20   : > { %645 = vsyncadd (%p753_p8), %s228_s29, 4294967168  ;;  %v265_v0 = vld [vmem:[%s231_s10] sm:$0xf]  ;;  %v482_v1 = vld [vmem:[%s231_s10 + $0x4] sm:$0xf]  ;;  %vm271_vm0 = vcmask 1043456   ;;  %v291_v13 = vlaneseq  ;;  %s392_s24 = scalar_lea.hbm %s848_s5, %s664_s21 }
  0x21   : > { %v269_v2 = vadd.f32 %v482_v1, %v265_v0  ;;  %v674_v4 = vmov 0   ;;  %vm263_vm1 = vcmask 24576   ;;  %v675_v5 = vmov 0.0   ;;  %v302_v12 = vld [vmem:[%s844_s1] sm:$0xf]  ;;  %s257_s27 = scalar_lea.vmem [#allocation6], %s780_s25 }
  0x22   : > { %555 = vset.pattern.permute.xlu0 %v674_v4  ;;  %264 = vst.msk [vmem:[#allocation2] sm:$0x1] %vm263_vm1, %v675_v5  ;;  %483 = vmatpush.msk.msra.mxu0 %vm271_vm0, %v302_v12  ;;  %v292_v14 = vand.u32 127, %v291_v13  ;;  %vm304_vm2 = vcmask 31744   ;;  %v332_v20 = vld [vmem:[%s846_s3] sm:$0x3] }
  0x23   : > { %v272_v3 = vsel %vm271_vm0, %v269_v2, 0.0  ;;  %vm338_vm3 = vcmask 1041408   ;;  %v303_v21 = vld [vmem:[%s845_s2] sm:$0x1]  ;;  %vm334_vm4 = vcmask 15360   ;;  %s394_s29 = sshll.u32 %s257_s27, 4  ;;  %s395_s29 = int_to_ptr.vmem [resolvable:$true] %s394_s29 }
  0x24   : > { %273 = vadd.xlane.f32.xlu0 %v272_v3  ;;  %485 = vmatpush.msk.msra.mxu1 %vm338_vm3, %v332_v20  ;;  %v333_v25 = vld [vmem:[%s847_s4] sm:$0x1]  ;;  %s396_s10 = sshll.u32 %s392_s24, 4  ;;  %vm381_vm8 = vcmask 253952   ;;  %s384_s21 = scalar_lea.sflag [#allocation5], %s780_s25  ;;  %s397_s10 = int_to_ptr.hbm [resolvable:$true] %s396_s10 }
  0x25   : > { %s604_s28 = sshra.s32 %s397_s10, 4  ;;  %s610_s12 = scalar_lea.hbm %s848_s5, 2  ;;  %s605_s28 = int_to_ptr.hbm [resolvable:$true] %s604_s28 }
  0x26   : > { %s606_s30 = scalar_lea.hbm %s605_s28, 1  ;;  %p611_p7 = scmp.lt.s32.totalorder %s605_s28, %s848_s5 }
  0x27   : > { %p607_p4 = scmp.ne.s32.totalorder %s605_s28, %s606_s30  ;;  %p612_p8 = scmp.lt.s32.totalorder %s610_s12, %s606_s30 }
  0x29   : > { %v270_v16 = vld [vmem:[#allocation2] sm:$0x1]  ;;  %p608_p5 = pnand %p607_p4, %p757_p9  ;;  %p613_p10 = por %p612_p8, %p611_p7 }
  0x2b   : > { %p609_p6 = pneg %p608_p5 }
  0x2d   : > { %p614_p13 = pnand %p613_p10, %p609_p6 }
  0x97   : > { %v274_v6 = vpop.xlane.xlu0 %273 }
  0x98   : > { %v276_v7 = vperm.slane %v274_v6, 0  ;;  %v277_v8 = vperm.slane %v274_v6, 1  ;;  %v278_v9 = vperm.slane %v274_v6, 2  ;;  %v279_v10 = vperm.slane %v274_v6, 3 }
  0x9a   : > { %280 = vst [vmem:[#allocation1] ss:$9 sm:$0xff] %v276_v7 }
  0x9b   : > { %282 = vst [vmem:[#allocation1 + $0x1] ss:$9 sm:$0xff] %v277_v8 }
  0x9c   : > { %284 = vst [vmem:[#allocation1 + $0x2] ss:$9 sm:$0xff] %v278_v9 }
  0x9d   : > { %286 = vst [vmem:[#allocation1 + $0x3] ss:$9 sm:$0xff] %v279_v10 }
  0xa4   : > { %v287_v11 = vld [vmem:[#allocation1] sm:$0xff] }
  0xa5   : > { %289 = vperm.xlu0 %555, %v287_v11  }
 0x117   : > { %v290_v15 = vpop.permute.xlu0 %289 }
 0x118   : > { %v293_v17 = vperm.slane %v290_v15, %v292_v14 }
 0x11a   : > { %v295_v18 = vadd.f32 %v293_v17, %v270_v16 }
 0x11c   : > { %297 = vst.msk [vmem:[#allocation2] sm:$0x1] %vm263_vm1, %v295_v18 }
 0x123   : > { %v301_v19 = vld [vmem:[#allocation2] sm:$0x1] }
 0x124   : > { %484 = vmatmul.msk.f32.vlgmr.msra.gmra.mxu0 %vm304_vm2, %v301_v19 }
 0x1a1   : > { %v328_v22 = vpop.f32.mrf.mxu0 }
 0x1a2   : > { %v329_v23 = vadd.f32 %v328_v22, %v303_v21 }
 0x1a4   : > { %v331_v24 = vmax.f32 %v329_v23, 0.0 }
 0x1a6   : > { %486 = vmatmul.msk.f32.vlgmr.msra.gmra.mxu1 %vm334_vm4, %v331_v24 }
 0x223   : > { %v359_v26 = vpop.f32.mrf.mxu1 }
 0x224   : > { %v360_v27 = vadd.f32 %v359_v26, %v333_v25 }
 0x226   : > { %v487_v28 = vmul.f32 -1.442695, %v360_v27 }
 0x228   : > { %556 = vpow2.f32 %v487_v28 }
 0x22e   : > { %v557_v29 = vpop.eup %556 }
 0x22f   : > { %v365_v30 = vadd.f32 1.0, %v557_v29 }
 0x231   : > { %558 = vrcp.f32 %v365_v30  ;;  %v377_v34 = vand.u32 2147483648, %v365_v30  ;;  %v375_v36 = vand.u32 2147483647, %v365_v30  ;;  %vm371_vm6 = vweird.f32 %v365_v30 }
 0x233   : > { %v378_v38 = vor.u32 1.1754944e-38, %v377_v34  ;;  %vm376_vm9 = vcmp.eq.f32.partialorder %v375_v36, 8.507059e+37 }
 0x237   : > { %v559_v31 = vpop.eup %558 }
 0x238   : > { %v367_v32 = vmul.f32 %v559_v31, %v365_v30  ;;  %vm372_vm5 = vweird.f32 %v559_v31 }
 0x239   : > { %vm373_vm7 = vmor %vm371_vm6, %vm372_vm5 }
 0x23a   : > { %v368_v33 = vsub.f32 1.0, %v367_v32 }
 0x23c   : > { %v369_v35 = vmul.f32 %v559_v31, %v368_v33 }
 0x23e   : > { %v370_v37 = vadd.f32 %v559_v31, %v369_v35 }
 0x240   : > { %v374_v39 = vsel %vm373_vm7, %v559_v31, %v370_v37 }
 0x241   : > { %v379_v40 = vsel %vm376_vm9, %v378_v38, %v374_v39 }
 0x242   : > { %382 = vst.msk [vmem:[%s257_s27] sm:$0x1] %vm381_vm8, %v379_v40 }
 0x243   : > { %617 = shalt.err (!%p614_p13)
}
 0x244   : > { %493 = dma.vmem_to_hbm [thread:$0]  (%p757_p9), %s395_s29, 16, %s397_s10, %s384_s21  }
 0x245 PF: > { %s408_s25 = sand.u32 1, %s652_s18   ;;  %p500_p0 = pnand %p476_p12, %p764_p11 }
 0x246   : > { %s409_s15 = scalar_lea.sflag [#allocation5], %s408_s25 }
 0x247   : > { %p501_p1 = pneg %p500_p0 }
 0x249   : > { %647 = dma.done.wait (%p501_p1), %s409_s15, 16  }
 0x24a   : > { %649 = vsyncadd (%p501_p1), %s409_s15, 4294967280  ;;  %s21_s23 = sadd.s32 1, %s672_s23   ;;  %s853_s18 = smov %s656_s19 }
 0x24b   : > { %p18_p2 = scmp.ge.s32.totalorder %s21_s23, 4   ;;  %s854_s19 = smov %s660_s20 }
 0x24c   : > { %s855_s20 = smov %s762_s7  ;;  %s856_s21 = smov %s668_s22 }
 0x24d   : > { %s857_s22 = smov %s859_s26  ;;  %20 = sbr.rel (!%p18_p2) target bundleno = 6 (0x6), region = 97 }
 0x252   :  { %414 = vsyncpa [#allocation4], 1 }
 0x253   :  { %416 = vsyncpa [#allocation4 + $0x1], 1 }
 0x254   :  { %417 = vsyncpa [#allocation5], 1 }
 0x255   :  { %419 = vsyncpa [#allocation5 + $0x1], 1 }

</bundles_post_ra>
